<compile_context>
chip_gen: v7x
topology: tpu7x:2x2x1
jax: 0.10.0
libtpu: 0.0.40
codegen_flags: <defaults>
</compile_context>

<pallas_src>
import functools

import jax
import jax.numpy as jnp
from jax.experimental import pallas as pl
from jax.experimental.pallas import tpu as pltpu

LANE = 128        # lane width of a vreg
AUG = 8           # augmented input rows (2 features + 1 bias row + 5 zero pad)
MAX_TILE = 8192   # batch-tile cap: (64, 8192) f32 intermediate = 2 MiB


def pinn_kernel(x_ref, w1_ref, w2_ref, b2_ref, w3_ref, b3_ref, o_ref,
                *, compute_dtype):
    """One batch tile, feature-major: x_aug (8, TN) -> out (1, TN)."""
    cd = compute_dtype

    # Layer 1 (Linear(2,64) + bias folded) + tanh: augmented matmul on the MXU.
    x = x_ref[...].astype(cd)                              # (8, TN)
    h1 = jnp.tanh(
        jnp.dot(w1_ref[...].astype(cd), x,
                preferred_element_type=jnp.float32)        # (64, TN) f32
    )

    # Layer 2 (Linear(64,64) + tanh): the real 64x64 matmul -> MXU, f32 accum.
    h2 = jnp.tanh(
        jnp.dot(w2_ref[...].astype(cd), h1.astype(cd),
                preferred_element_type=jnp.float32)
        + b2_ref[...]                                      # (64, 1) broadcast
    )                                                      # (64, TN) f32

    # Layer 3 (Linear(64,1)): N_out=1 -> elementwise multiply + sublane reduce
    # (XLU) instead of a degenerate MXU matmul.
    o_ref[...] = (
        jnp.sum(w3_ref[...] * h2, axis=0, keepdims=True)   # (1, TN)
        + b3_ref[...]                                      # (1, 1) broadcast
    )


def _round_up(x, m):
    return (x + m - 1) // m * m


def _choose_tiling(n):
    """Balanced, lane-dense batch tiles.

    * steps >= cdiv(n, MAX_TILE) so tiles fit comfortably in VMEM,
    * steps >= 2 whenever n > LANE so v7x megacore ("parallel") has work on
      both TensorCores,
    * tn = round_up(cdiv(n, steps), 128) keeps padding waste < 128 rows/step.
    """
    steps = max(pl.cdiv(n, MAX_TILE), 2 if n > LANE else 1)
    tn = min(_round_up(pl.cdiv(n, steps), LANE), MAX_TILE)
    n_pad = steps * tn
    return tn, n_pad, steps


def pack_params(params):
    """Pack PyTorch-layout params into the kernel's feature-major layout.

    Call once outside the training loop.
      w1_aug: (64, 8)  cols 0..1 = W1, col 2 = b1, cols 3..7 = 0
      w2    : (64, 64)
      b2    : (64, 1)
      w3    : (64, 1)  (W3 transposed, for multiply + sublane-reduce)
      b3    : (1, 1)
    """
    w1, b1 = params["w1"], params["b1"]          # (64, 2), (64,)
    w2, b2 = params["w2"], params["b2"]          # (64, 64), (64,)
    w3, b3 = params["w3"], params["b3"]          # (1, 64), (1,)
    h = w2.shape[0]
    w1_aug = jnp.zeros((h, AUG), jnp.float32)
    w1_aug = w1_aug.at[:, :2].set(w1).at[:, 2].set(b1)
    return {
        "w1_aug": w1_aug,
        "w2": w2.astype(jnp.float32),
        "b2": b2.reshape(h, 1).astype(jnp.float32),
        "w3": w3.T.astype(jnp.float32),
        "b3": b3.reshape(1, 1).astype(jnp.float32),
    }


@functools.partial(jax.jit, static_argnames=("use_bf16",))
def pinn_forward(x, packed, use_bf16=False):
    """x: (N, 2) float32 -> (N, 1) float32.

    For repeated calls in a training loop, prefer keeping x feature-major and
    consuming the (1, N) output directly to avoid the transpose round trips.
    # TODO(synk): expose a feature-major entry point if the caller can hold
    # collocation points as (2, N).
    """
    n, din = x.shape
    h = packed["w2"].shape[0]
    tn, n_pad, steps = _choose_tiling(n)

    # Augmented feature-major input: rows 0..1 = x^T, row 2 = ones (bias),
    # rows 3..7 = 0; batch (lane) axis zero-padded to n_pad.
    xt = jnp.concatenate([x.T, jnp.ones((1, n), x.dtype)], axis=0)   # (3, N)
    xt = jnp.pad(xt, ((0, AUG - din - 1), (0, n_pad - n)))           # (8, N_pad)

    full = lambda shape: pl.BlockSpec(shape, lambda i: (0, 0))
    compute_dtype = jnp.bfloat16 if use_bf16 else jnp.float32

    out_t = pl.pallas_call(
        functools.partial(pinn_kernel, compute_dtype=compute_dtype),
        out_shape=jax.ShapeDtypeStruct((1, n_pad), jnp.float32),
        grid_spec=pltpu.PrefetchScalarGridSpec(
            num_scalar_prefetch=0,
            grid=(steps,),
            in_specs=[
                pl.BlockSpec((AUG, tn), lambda i: (0, i)),   # x_aug tile (8, TN)
                full((h, AUG)),                              # W1_aug (64, 8)
                full((h, h)),                                # W2     (64, 64)
                full((h, 1)),                                # b2     (64, 1)
                full((h, 1)),                                # W3^T   (64, 1)
                full((1, 1)),                                # b3     (1, 1)
            ],
            out_specs=pl.BlockSpec((1, tn), lambda i: (0, i)),
        ),
        compiler_params=pltpu.CompilerParams(
            dimension_semantics=("parallel",),   # shards batch tiles across TCs (v7x)
        ),
    )(xt, packed["w1_aug"], packed["w2"], packed["b2"],
      packed["w3"], packed["b3"])

    return out_t[:, :n].T                                    # (N, 1)


def init_params(key):
    """PyTorch nn.Linear default init: U(-1/sqrt(fan_in), +1/sqrt(fan_in)).

    Natural PyTorch shapes: w1 (64,2) b1 (64,) w2 (64,64) b2 (64,) w3 (1,64) b3 (1,).
    """
    dims = [(2, 64), (64, 64), (64, 1)]
    params = {}
    keys = jax.random.split(key, 2 * len(dims))
    for li, (fan_in, fan_out) in enumerate(dims):
        bound = 1.0 / float(fan_in) ** 0.5
        wk, bk = keys[2 * li], keys[2 * li + 1]
        params[f"w{li + 1}"] = jax.random.uniform(
            wk, (fan_out, fan_in), jnp.float32, -bound, bound)
        params[f"b{li + 1}"] = jax.random.uniform(
            bk, (fan_out,), jnp.float32, -bound, bound)
    return params


def pinn_reference(x, params):
    """Pure-JAX reference identical to the PyTorch module."""
    h1 = jnp.tanh(x @ params["w1"].T + params["b1"])
    h2 = jnp.tanh(h1 @ params["w2"].T + params["b2"])
    return h2 @ params["w3"].T + params["b3"]


if __name__ == "__main__":
    key = jax.random.PRNGKey(0)
    pkey, xkey = jax.random.split(key)

    params = init_params(pkey)
    packed = pack_params(params)

    # x = (t, S) collocation points for the Black-Scholes PINN, N=256 rows.
    x = jax.random.uniform(xkey, (256, 2), jnp.float32)

    out = pinn_forward(x, packed)            # f32 path (strict tolerance)
    out = jax.block_until_ready(out)
    ref = pinn_reference(x, params)
    assert out.shape == (256, 1) and out.dtype == jnp.float32
    assert jnp.allclose(out, ref, atol=1e-5, rtol=1e-4)

    # Optional bf16 compute path (v6e/v7x) -- looser tolerance by design.
    out_bf16 = jax.block_until_ready(pinn_forward(x, packed, use_bf16=True))
    assert jnp.allclose(out_bf16, ref, atol=2e-2, rtol=2e-2)

    # Non-multiple-of-128 batch exercises the balanced-tile / padding path.
    x_odd = jax.random.uniform(jax.random.PRNGKey(1), (333, 2), jnp.float32)
    out_odd = jax.block_until_ready(pinn_forward(x_odd, packed))
    assert jnp.allclose(out_odd, pinn_reference(x_odd, params), atol=1e-5, rtol=1e-4)

    print("KERNEL_OK")
</pallas_src>

<mosaic_0001>
module attributes {stable_mosaic.version = 11 : i64} {
  func.func @pinn_kernel(%arg0: i32, %arg1: memref<8x128xf32, #tpu.memory_space<vmem>>, %arg2: memref<64x8xf32, #tpu.memory_space<vmem>>, %arg3: memref<64x64xf32, #tpu.memory_space<vmem>>, %arg4: memref<64x1xf32, #tpu.memory_space<vmem>>, %arg5: memref<64x1xf32, #tpu.memory_space<vmem>>, %arg6: memref<1x1xf32, #tpu.memory_space<vmem>>, %arg7: memref<1x128xf32, #tpu.memory_space<vmem>>) attributes {dimension_semantics = [#tpu.dimension_semantics<parallel>], iteration_bounds = array<i64: 2>, scalar_prefetch = 0 : i64, scratch_operands = 0 : i64, tpu.core_type = #tpu.core_type<tc>, window_params = [{transform_indices = @transform_0, window_bounds = array<i64: 8, 128>}, {pipeline_mode = #tpu.pipeline_mode<synchronous>, transform_indices = @transform_1, window_bounds = array<i64: 64, 8>}, {pipeline_mode = #tpu.pipeline_mode<synchronous>, transform_indices = @transform_2, window_bounds = array<i64: 64, 64>}, {pipeline_mode = #tpu.pipeline_mode<synchronous>, transform_indices = @transform_3, window_bounds = array<i64: 64, 1>}, {pipeline_mode = #tpu.pipeline_mode<synchronous>, transform_indices = @transform_4, window_bounds = array<i64: 64, 1>}, {pipeline_mode = #tpu.pipeline_mode<synchronous>, transform_indices = @transform_5, window_bounds = array<i64: 1, 1>}, {transform_indices = @transform_6, window_bounds = array<i64: 1, 128>}]} {
    %c0 = arith.constant 0 : index
    %c0_0 = arith.constant 0 : index
    %0 = vector.load %arg1[%c0, %c0_0] : memref<8x128xf32, #tpu.memory_space<vmem>>, vector<8x128xf32>
    %c0_1 = arith.constant 0 : index
    %c0_2 = arith.constant 0 : index
    %1 = vector.load %arg2[%c0_1, %c0_2] : memref<64x8xf32, #tpu.memory_space<vmem>>, vector<64x8xf32>
    %cst = arith.constant dense<0.000000e+00> : vector<64x128xf32>
    %2 = tpu.matmul %1, %0, %cst {dimension_numbers = #tpu.dot_dimension_numbers<[1], [0], [0], [1], [0, 0, 1, 1], [], []>} : vector<64x8xf32>, vector<8x128xf32>, vector<64x128xf32> -> vector<64x128xf32>
    %3 = math.tanh %2 : vector<64x128xf32>
    %c0_3 = arith.constant 0 : index
    %c0_4 = arith.constant 0 : index
    %4 = vector.load %arg3[%c0_3, %c0_4] : memref<64x64xf32, #tpu.memory_space<vmem>>, vector<64x64xf32>
    %cst_5 = arith.constant dense<0.000000e+00> : vector<64x128xf32>
    %5 = tpu.matmul %4, %3, %cst_5 {dimension_numbers = #tpu.dot_dimension_numbers<[1], [0], [0], [1], [0, 0, 1, 1], [], []>} : vector<64x64xf32>, vector<64x128xf32>, vector<64x128xf32> -> vector<64x128xf32>
    %c0_6 = arith.constant 0 : index
    %c0_7 = arith.constant 0 : index
    %6 = vector.load %arg4[%c0_6, %c0_7] : memref<64x1xf32, #tpu.memory_space<vmem>>, vector<64x1xf32>
    %7 = vector.broadcast %6 : vector<64x1xf32> to vector<64x128xf32>
    %8 = arith.addf %5, %7 : vector<64x128xf32>
    %9 = math.tanh %8 : vector<64x128xf32>
    %c0_8 = arith.constant 0 : index
    %c0_9 = arith.constant 0 : index
    %10 = vector.load %arg5[%c0_8, %c0_9] : memref<64x1xf32, #tpu.memory_space<vmem>>, vector<64x1xf32>
    %11 = vector.broadcast %10 : vector<64x1xf32> to vector<64x128xf32>
    %12 = arith.mulf %11, %9 : vector<64x128xf32>
    %cst_10 = arith.constant dense<0.000000e+00> : vector<128xf32>
    %13 = vector.multi_reduction <add>, %12, %cst_10 [0] : vector<64x128xf32> to vector<128xf32>
    %14 = vector.shape_cast %13 : vector<128xf32> to vector<1x128xf32>
    %c0_11 = arith.constant 0 : index
    %c0_12 = arith.constant 0 : index
    %15 = vector.load %arg6[%c0_11, %c0_12] : memref<1x1xf32, #tpu.memory_space<vmem>>, vector<1x1xf32>
    %16 = vector.broadcast %15 : vector<1x1xf32> to vector<1x128xf32>
    %17 = arith.addf %14, %16 : vector<1x128xf32>
    %c0_13 = arith.constant 0 : index
    %c0_14 = arith.constant 0 : index
    %18 = vector.load %arg7[%c0_13, %c0_14] : memref<1x128xf32, #tpu.memory_space<vmem>>, vector<1x128xf32>
    tpu.vector_store %arg7[%c0_13, %c0_14], %17 {strides = array<i32>} : memref<1x128xf32, #tpu.memory_space<vmem>>, vector<1x128xf32>,
    return
  }
  func.func @transform_0(%arg0: i32) -> (i32, i32) {
    %c0_i32 = arith.constant 0 : i32
    %c0_i32_0 = arith.constant 0 : i32
    return %c0_i32, %arg0 : i32, i32
  }
  func.func @transform_1(%arg0: i32) -> (i32, i32) {
    %c0_i32 = arith.constant 0 : i32
    %c0_i32_0 = arith.constant 0 : i32
    %c0_i32_1 = arith.constant 0 : i32
    return %c0_i32, %c0_i32_0 : i32, i32
  }
  func.func @transform_2(%arg0: i32) -> (i32, i32) {
    %c0_i32 = arith.constant 0 : i32
    %c0_i32_0 = arith.constant 0 : i32
    %c0_i32_1 = arith.constant 0 : i32
    return %c0_i32, %c0_i32_0 : i32, i32
  }
  func.func @transform_3(%arg0: i32) -> (i32, i32) {
    %c0_i32 = arith.constant 0 : i32
    %c0_i32_0 = arith.constant 0 : i32
    %c0_i32_1 = arith.constant 0 : i32
    return %c0_i32, %c0_i32_0 : i32, i32
  }
  func.func @transform_4(%arg0: i32) -> (i32, i32) {
    %c0_i32 = arith.constant 0 : i32
    %c0_i32_0 = arith.constant 0 : i32
    %c0_i32_1 = arith.constant 0 : i32
    return %c0_i32, %c0_i32_0 : i32, i32
  }
  func.func @transform_5(%arg0: i32) -> (i32, i32) {
    %c0_i32 = arith.constant 0 : i32
    %c0_i32_0 = arith.constant 0 : i32
    %c0_i32_1 = arith.constant 0 : i32
    return %c0_i32, %c0_i32_0 : i32, i32
  }
  func.func @transform_6(%arg0: i32) -> (i32, i32) {
    %c0_i32 = arith.constant 0 : i32
    %c0_i32_0 = arith.constant 0 : i32
    return %c0_i32, %arg0 : i32, i32
  }
}

</mosaic_0001>

<bundles_post_ra>
// kernel: pinn_forward.1
= control target key start
LH: loop header
LB: loop body
LE: loop exit
PB: predicated region body
PF: predicated region fallthrough
CT: control target
= control target key end

     0   :  { %s1243_s0 = inlined_call_operand.vmem [shape: f32[8,256], index: 0, kind: input, shape index: {}]   ;;  %s1244_s1 = inlined_call_operand.vmem [shape: f32[64,8], index: 1, kind: input, shape index: {}]   ;;  %s1245_s2 = inlined_call_operand.vmem [shape: f32[64,64], index: 2, kind: input, shape index: {}]   ;;  %s1246_s3 = inlined_call_operand.vmem [shape: f32[64,1], index: 3, kind: input, shape index: {}]   ;;  %s1247_s4 = inlined_call_operand.vmem [shape: f32[64,1], index: 4, kind: input, shape index: {}]   ;;  %s1248_s5 = inlined_call_operand.<no memory space> [shape: f32[1,1], index: 5, kind: input, shape index: {}]   ;;  %s1249_s6 = inlined_call_operand.hbm [shape: f32[1,256], index: 6, kind: output, shape index: {}]  }
   0x1   :  { %v11_v0 = vstv %s1248_s5 }
   0x2   :  { %12 = vst [vmem:[#allocation2] sm:$0x1] %v11_v0 }
   0x3   :  { %13 = vsyncpa [#allocation4], 0 }
   0x4   :  { %15 = vsyncpa [#allocation4 + $0x1], 0  ;;  %s1031_s23 = smov 0   ;;  %s1033_s24 = smov 0  }
   0x5   :  { %s1035_s25 = smov 0   ;;  %s1037_s26 = smov 0  }
   0x6 LB: > { %s1052_s5 = sadd.s32 4294967295, %s989_s26   ;;  %s738_s27 = sadd.s32 4294967294, %s989_s26   ;;  %s989_s26 = sphi %s1037_s26, %s1255_s26   ;;  %s985_s25 = sphi %s1035_s25, %s1254_s25   ;;  %s981_s24 = sphi %s1033_s24, %s1253_s24   ;;  %s977_s23 = sphi %s1031_s23, %s1252_s23  }
   0x7   : > { %s1056_s28 = sadd.s32 1, %s989_s26   ;;  %s159_s29 = sadd.s32 1, %s985_s25 }
   0x8   : > { %s156_s30 = ssub.s32 %s989_s26, %s1056_s28  ;;  %p169_p0 = scmp.ne.s32.totalorder %s985_s25, %s981_s24 }
   0x9   : > { %p157_p1 = scmp.eq.s32.totalorder %s156_s30, 0  ;;  %p170_p2 = scmp.eq.s32.totalorder %s1052_s5, 1 }
   0xa   : > { %p175_p3 = scmp.ne.s32.totalorder %s981_s24, %s977_s23  ;;  %p176_p4 = scmp.eq.s32.totalorder %s738_s27, 1 }
   0xb   : > { %s1067_s7 = scalar_select %p157_p1, %s985_s25, %s159_s29  }
   0xc   : > { %p1069_p5 = por %p170_p2, %p169_p0  ;;  %p1073_p6 = por %p176_p4, %p175_p3 }
   0xd   : > { %p741_p7 = scmp.ge.s32.totalorder %s989_s26, 1  ;;  %p216_p8 = scmp.lt.s32.totalorder %s989_s26, 3 }
   0xf   : > { %p217_p9 = pnand %p741_p7, %p216_p8 }
  0x10   : > { %p244_p10 = scmp.lt.s32.totalorder (!%p217_p9), %s1052_s5, 1  ;;  %v249_v1 = vld [vmem:[%s1244_s1] sm:$0xff] (!%p217_p9)  ;;  %vm257_vm0 = vcmask (!%p217_p9), 64512   ;;  %v250_v3 = vld [vmem:[%s1244_s1 + $0x8] sm:$0xff] (!%p217_p9)  ;;  %v251_v4 = vld [vmem:[%s1244_s1 + $0x10] sm:$0xff] (!%p217_p9)  ;;  %vm451_vm1 = vcmask (!%p217_p9), 523264  }
  0x11   : > { %220 = sbr.rel (%p217_p9) target bundleno = 543 (0x21f), region = 44  ;;  %789 = vmatprep.mubr.msk.f32.mxu0 (!%p217_p9), %vm257_vm0, %v249_v1  ;;  %v252_v5 = vld [vmem:[%s1244_s1 + $0x18] sm:$0xff] (!%p217_p9)  ;;  %v253_v6 = vld [vmem:[%s1244_s1 + $0x20] sm:$0xff] (!%p217_p9)  ;;  %v254_v7 = vld [vmem:[%s1244_s1 + $0x28] sm:$0xff] (!%p217_p9)  ;;  %v991_v14 = vmov (!%p217_p9), 0   ;;  %s242_s15 = sand.u32 (!%p217_p9), 1, %s981_s24  }
  0x12   : > { %v255_v8 = vld [vmem:[%s1244_s1 + $0x30] sm:$0xff] (!%p217_p9)  ;;  %v256_v9 = vld [vmem:[%s1244_s1 + $0x38] sm:$0xff] (!%p217_p9)  ;;  %v395_v10 = vld [vmem:[%s1245_s2] sm:$0xff] (!%p217_p9)  ;;  %893 = vset.pattern.permute.xlu0 (!%p217_p9), %v991_v14  ;;  %894 = vset.pattern.permute.xlu1 (!%p217_p9), %v991_v14  ;;  %s243_s17 = scalar_lea.vmem (!%p217_p9), [#allocation3], %s242_s15  ;;  %s671_s22 = scalar_lea.sflag (!%p217_p9), [#allocation4], %s242_s15 }
  0x13   : > { %v397_v11 = vld [vmem:[%s1245_s2 + $0x10] sm:$0xff] (!%p217_p9)  ;;  %v403_v12 = vld [vmem:[%s1246_s3] sm:$0xff] (!%p217_p9)  ;;  %v404_v15 = vld [vmem:[%s1246_s3 + $0x8] sm:$0xff] (!%p217_p9)  ;;  %s683_s18 = sshll.u32 (!%p217_p9), %s243_s17, 4  ;;  %s1203_s18 = int_to_ptr.vmem [resolvable:$true] %s683_s18 }
  0x14   : > { %820 = vmatprep.mubr.msk.f32.mxu1 (!%p217_p9), %vm451_vm1, %v397_v11  ;;  %v405_v13 = vld [vmem:[%s1246_s3 + $0x10] sm:$0xff] (!%p217_p9)  ;;  %413 = vperm.xlu0 (!%p217_p9), %893, %v403_v12   ;;  %v406_v16 = vld [vmem:[%s1246_s3 + $0x18] sm:$0xff] (!%p217_p9)  ;;  %v407_v17 = vld [vmem:[%s1246_s3 + $0x20] sm:$0xff] (!%p217_p9)  ;;  %s927_s27 = scalar_lea.vmem (!%p217_p9), %s1203_s18, 16 }
  0x15   : > { %423 = vperm.xlu1 (!%p217_p9), %894, %v405_v13   ;;  %v408_v18 = vld [vmem:[%s1246_s3 + $0x28] sm:$0xff] (!%p217_p9)  ;;  %v409_v19 = vld [vmem:[%s1246_s3 + $0x30] sm:$0xff] (!%p217_p9)  ;;  %v410_v20 = vld [vmem:[%s1246_s3 + $0x38] sm:$0xff] (!%p217_p9)  ;;  %p928_p11 = scmp.ne.s32.totalorder (!%p217_p9), %s1203_s18, %s927_s27 }
  0x16   : > { %v589_v21 = vld [vmem:[%s1247_s4] sm:$0xff] (!%p217_p9)  ;;  %v590_v22 = vld [vmem:[%s1247_s4 + $0x8] sm:$0xff] (!%p217_p9)  ;;  %v591_v23 = vld [vmem:[%s1247_s4 + $0x10] sm:$0xff] (!%p217_p9) }
  0x17   : > { %v592_v24 = vld [vmem:[%s1247_s4 + $0x18] sm:$0xff] (!%p217_p9)  ;;  %v593_v25 = vld [vmem:[%s1247_s4 + $0x20] sm:$0xff] (!%p217_p9)  ;;  %v594_v26 = vld [vmem:[%s1247_s4 + $0x28] sm:$0xff] (!%p217_p9)  ;;  %p929_p12 = pnand (!%p217_p9), %p928_p11, %p1069_p5 }
  0x18   : > { %s245_s12 = scalar_select %p244_p10, %s1052_s5, 1  ;;  %418 = vperm.xlu0 %893, %v404_v15   ;;  %v595_v27 = vld [vmem:[%s1247_s4 + $0x30] sm:$0xff]  ;;  %v596_v28 = vld [vmem:[%s1247_s4 + $0x38] sm:$0xff]  ;;  %v658_v29 = vld [vmem:[#allocation2] sm:$0x1] }
  0x19   : > { %428 = vperm.xlu1 %894, %v406_v16   ;;  %v396_v50 = vld [vmem:[%s1245_s2 + $0x8] sm:$0xff]  ;;  %v398_v51 = vld [vmem:[%s1245_s2 + $0x18] sm:$0xff]  ;;  %v399_v52 = vld [vmem:[%s1245_s2 + $0x20] sm:$0xff]  ;;  %p930_p13 = pneg %p929_p12 }
  0x1a   : > { %s742_s13 = sshll.u32 %s245_s12, 3  ;;  %v400_v53 = vld [vmem:[%s1245_s2 + $0x28] sm:$0xff]  ;;  %v401_v54 = vld [vmem:[%s1245_s2 + $0x30] sm:$0xff]  ;;  %v402_v55 = vld [vmem:[%s1245_s2 + $0x38] sm:$0xff] }
  0x1b   : > { %s247_s16 = scalar_lea.vmem %s1243_s0, %s742_s13 }
  0x1c   : > { %v248_v2 = vld [vmem:[%s247_s16] sm:$0xff]  ;;  %433 = vperm.xlu0 %893, %v407_v17   ;;  %s759_s16 = sshll.u32 %s1052_s5, 4  ;;  %s992_s5 = smov [#allocation3]  }
  0x1d   : > { %787 = vmatprep.subr.mxu0 %v248_v2  ;;  %438 = vperm.xlu1 %894, %v408_v18   ;;  %s1201_s21 = scalar_lea.hbm %s1249_s6, %s759_s16  ;;  %s931_s29 = sshll.u32 %s992_s5, 4  ;;  %s932_s29 = int_to_ptr.vmem [resolvable:$false] %s931_s29 }
  0x1e   : > { %788 = vmatpush3.msra.mxu0 %v248_v2  ;;  %s933_s30 = scalar_lea.vmem %s932_s29, 32  ;;  %p934_p0 = scmp.lt.s32.totalorder %s1203_s18, %s932_s29 }
  0x1f   : > { %790 = vmatmul.mubr.msk.f32.vlgmr.msra.gmra.mrb[0].mxu0 %vm257_vm0, %v250_v3  ;;  %p935_p1 = scmp.lt.s32.totalorder %s933_s30, %s927_s27 }
  0x20   : > { %792 = vmatprep.mubr.msk.f32.mxu0 %vm257_vm0, %v251_v4  ;;  %443 = vperm.xlu0 %893, %v409_v19  }
  0x21   : > { %448 = vperm.xlu1 %894, %v410_v20   ;;  %p936_p2 = por %p935_p1, %p934_p0 }
  0x23   : > { %793 = vmatmul.mubr.msk.f32.gmra.mrb[2].mxu0 %vm257_vm0, %v252_v5  ;;  %p937_p3 = pnand %p936_p2, %p930_p13 }
  0x24   : > { %795 = vmatprep.mubr.msk.f32.mxu0 %vm257_vm0, %v253_v6  ;;  %599 = vperm.xlu0 %893, %v589_v21  }
  0x25   : > { %604 = vperm.xlu1 %894, %v590_v22  }
  0x27   : > { %796 = vmatmul.mubr.msk.f32.gmra.mrb[4].mxu0 %vm257_vm0, %v254_v7 }
  0x28   : > { %798 = vmatprep.mubr.msk.f32.mxu0 %vm257_vm0, %v255_v8  ;;  %609 = vperm.xlu0 %893, %v591_v23  }
  0x29   : > { %614 = vperm.xlu1 %894, %v592_v24  }
  0x2b   : > { %799 = vmatmul.mubr.msk.f32.gmra.mrb[6].mxu0 %vm257_vm0, %v256_v9 }
  0x2c   : > { %817 = vmatprep.mubr.msk.f32.mxu0 %vm451_vm1, %v395_v10  ;;  %619 = vperm.xlu0 %893, %v593_v25  }
  0x2d   : > { %624 = vperm.xlu1 %894, %v594_v26  }
  0x30   : > { %629 = vperm.xlu0 %893, %v595_v27  }
  0x31   : > { %634 = vperm.xlu1 %894, %v596_v28  }
  0x34   : > { %661 = vperm.xlu0 %893, %v658_v29  }
  0x93   : > { %v414_v56 = vpop.permute.xlu0 %413 }
  0x94   : > { %v424_v57 = vpop.permute.xlu1 %423 }
  0x97   : > { %v419_v58 = vpop.permute.xlu0 %418 }
  0x98   : > { %v429_v59 = vpop.permute.xlu1 %428 }
  0x9b   : > { %v434_v60 = vpop.permute.xlu0 %433 }
  0x9c   : > { %v439_v61 = vpop.permute.xlu1 %438 }
  0x9f   : > { %v444_v62 = vpop.permute.xlu0 %443 }
  0xa0   : > { %v449_v6 = vpop.permute.xlu1 %448 }
  0xa3   : > { %v600_v11 = vpop.permute.xlu0 %599 }
  0xa4   : > { %v605_v14 = vpop.permute.xlu1 %604 }
  0xa7   : > { %v610_v19 = vpop.permute.xlu0 %609 }
  0xa8   : > { %v615_v22 = vpop.permute.xlu1 %614 }
  0xab   : > { %v620_v29 = vpop.permute.xlu0 %619 }
  0xf2   : > { %v791_v30 = vpop.f32.mrb[0].mxu0 }
  0xf3   : > { %895 = vtanh.f32 %v791_v30  ;;  %v348_v31 = vpop.f32.mrb[1].mxu0 }
  0xf4   : > { %897 = vtanh.f32 %v348_v31 }
  0xf6   : > { %v794_v32 = vpop.f32.mrb[2].mxu0 }
  0xf7   : > { %899 = vtanh.f32 %v794_v32  ;;  %v358_v33 = vpop.f32.mrb[3].mxu0 }
  0xf8   : > { %901 = vtanh.f32 %v358_v33  ;;  %v625_v33 = vpop.permute.xlu1 %624 }
  0xfa   : > { %v797_v34 = vpop.f32.mrb[4].mxu0 }
  0xfb   : > { %903 = vtanh.f32 %v797_v34  ;;  %v368_v35 = vpop.f32.mrb[5].mxu0 }
  0xfc   : > { %905 = vtanh.f32 %v368_v35 }
  0xfd   : > { %v896_v36 = vpop.eup %895 }
  0xfe   : > { %v898_v37 = vpop.eup %897  ;;  %v800_v38 = vpop.f32.mrb[6].mxu0 }
  0xff   : > { %907 = vtanh.f32 %v800_v38  ;;  %v378_v39 = vpop.f32.mrb[7].mxu0  ;;  %v829_v40 = vpack.c.bf16 %v896_v36, %v898_v37 }
 0x100   : > { %909 = vtanh.f32 %v378_v39 }
 0x101   : > { %v900_v41 = vpop.eup %899  ;;  %830 = vmatprep.subr.bf16.mxu0 %v829_v40  ;;  %845 = vmatprep.subr.bf16.mxu1 %v829_v40 }
 0x102   : > { %v902_v42 = vpop.eup %901  ;;  %832 = vmatpush3.bf16.msra.mxu0 %v829_v40  ;;  %849 = vmatpush3.bf16.msra.mxu1 %v829_v40  ;;  %v630_v40 = vpop.permute.xlu0 %629 }
 0x103   : > { %v833_v43 = vpack.c.bf16 %v900_v41, %v902_v42 }
 0x105   : > { %v904_v44 = vpop.eup %903  ;;  %834 = vmatprep.subr.bf16.mxu0 %v833_v43  ;;  %846 = vmatprep.subr.bf16.mxu1 %v833_v43 }
 0x106   : > { %v906_v45 = vpop.eup %905  ;;  %836 = vmatpush3.bf16.msra.mxu0 %v833_v43  ;;  %850 = vmatpush3.bf16.msra.mxu1 %v833_v43  ;;  %v635_v43 = vpop.permute.xlu1 %634 }
 0x107   : > { %v837_v46 = vpack.c.bf16 %v904_v44, %v906_v45 }
 0x109   : > { %v908_v47 = vpop.eup %907  ;;  %838 = vmatprep.subr.bf16.mxu0 %v837_v46  ;;  %847 = vmatprep.subr.bf16.mxu1 %v837_v46 }
 0x10a   : > { %v910_v48 = vpop.eup %909  ;;  %840 = vmatpush3.bf16.msra.mxu0 %v837_v46  ;;  %851 = vmatpush3.bf16.msra.mxu1 %v837_v46  ;;  %v664_v46 = vlaneseq }
 0x10b   : > { %v841_v49 = vpack.c.bf16 %v908_v47, %v910_v48 }
 0x10d   : > { %842 = vmatprep.subr.bf16.mxu0 %v841_v49  ;;  %848 = vmatprep.subr.bf16.mxu1 %v841_v49 }
 0x10e   : > { %844 = vmatpush3.bf16.msra.mxu0 %v841_v49  ;;  %852 = vmatpush3.bf16.msra.mxu1 %v841_v49  ;;  %v665_v49 = vshrl.u32 %v664_v46, 7 }
 0x111   : > { %818 = vmatmul.mubr.msk.f32.vlgmr.msra.gmra.mrb[8].mxu0 %vm451_vm1, %v396_v50  ;;  %821 = vmatmul.mubr.msk.f32.vlgmr.msra.gmra.mrb[0].mxu1 %vm451_vm1, %v398_v51 }
 0x112   : > { %823 = vmatprep.mubr.msk.f32.mxu1 %vm451_vm1, %v399_v52  ;;  %v666_v52 = vsub.s32 0, %v665_v49 }
 0x115   : > { %824 = vmatmul.mubr.msk.f32.gmra.mrb[2].mxu1 %vm451_vm1, %v400_v53 }
 0x116   : > { %826 = vmatprep.mubr.msk.f32.mxu1 %vm451_vm1, %v401_v54  ;;  %v662_v54 = vpop.permute.xlu0 %661 }
 0x119   : > { %827 = vmatmul.mubr.msk.f32.gmra.mrb[4].mxu1 %vm451_vm1, %v402_v55 }
 0x1e4   : > { %v819_v63 = vpop.f32.mrb[8].mxu0  ;;  %v822_v0 = vpop.f32.mrb[0].mxu1 }
 0x1e5   : > { %v548_v1 = vadd.f32 %v819_v63, %v419_v58  ;;  %v542_v2 = vpop.f32.mrb[9].mxu0  ;;  %v552_v3 = vpop.f32.mrb[1].mxu1  ;;  %v558_v7 = vadd.f32 %v822_v0, %v429_v59 }
 0x1e6   : > { %v543_v4 = vadd.f32 %v542_v2, %v414_v56  ;;  %v553_v5 = vadd.f32 %v552_v3, %v424_v57  ;;  %v667_v56 = vrot.slane %v662_v54, %v666_v52 }
 0x1e7   : > { %911 = vtanh.f32 %v548_v1 }
 0x1e8   : > { %v825_v8 = vpop.f32.mrb[2].mxu1  ;;  %913 = vtanh.f32 %v543_v4 }
 0x1e9   : > { %v562_v9 = vpop.f32.mrb[3].mxu1  ;;  %915 = vtanh.f32 %v553_v5  ;;  %v568_v12 = vadd.f32 %v825_v8, %v439_v61 }
 0x1ea   : > { %v563_v10 = vadd.f32 %v562_v9, %v434_v60  ;;  %917 = vtanh.f32 %v558_v7 }
 0x1ec   : > { %v828_v13 = vpop.f32.mrb[4].mxu1  ;;  %919 = vtanh.f32 %v563_v10 }
 0x1ed   : > { %v572_v15 = vpop.f32.mrb[5].mxu1  ;;  %921 = vtanh.f32 %v568_v12  ;;  %v578_v17 = vadd.f32 %v828_v13, %v449_v6 }
 0x1ee   : > { %v573_v16 = vadd.f32 %v572_v15, %v444_v62 }
 0x1f0   : > { %923 = vtanh.f32 %v573_v16 }
 0x1f1   : > { %v912_v18 = vpop.eup %911  ;;  %925 = vtanh.f32 %v578_v17 }
 0x1f2   : > { %v638_v20 = vmul.f32 %v912_v18, %v605_v14  ;;  %v914_v21 = vpop.eup %913 }
 0x1f3   : > { %v916_v23 = vpop.eup %915  ;;  %v637_v24 = vmul.f32 %v914_v21, %v600_v11 }
 0x1f4   : > { %v918_v25 = vpop.eup %917  ;;  %v639_v27 = vmul.f32 %v916_v23, %v610_v19 }
 0x1f5   : > { %v645_v26 = vadd.f32 %v638_v20, %v637_v24  ;;  %v640_v30 = vmul.f32 %v918_v25, %v615_v22 }
 0x1f6   : > { %v920_v28 = vpop.eup %919 }
 0x1f7   : > { %v646_v31 = vadd.f32 %v645_v26, %v639_v27  ;;  %v922_v32 = vpop.eup %921  ;;  %v641_v34 = vmul.f32 %v920_v28, %v620_v29 }
 0x1f8   : > { %v642_v37 = vmul.f32 %v922_v32, %v625_v33 }
 0x1f9   : > { %v647_v35 = vadd.f32 %v646_v31, %v640_v30 }
 0x1fa   : > { %v924_v36 = vpop.eup %923 }
 0x1fb   : > { %v648_v38 = vadd.f32 %v647_v35, %v641_v34  ;;  %v926_v39 = vpop.eup %925  ;;  %v643_v41 = vmul.f32 %v924_v36, %v630_v40 }
 0x1fc   : > { %v644_v44 = vmul.f32 %v926_v39, %v635_v43 }
 0x1fd   : > { %v649_v42 = vadd.f32 %v648_v38, %v642_v37 }
 0x1ff   : > { %v650_v45 = vadd.f32 %v649_v42, %v643_v41 }
 0x201   : > { %v651_v47 = vadd.f32 %v650_v45, %v644_v44 }
 0x203   : > { %v652_v48 = vrot.slane %v651_v47, 4 }
 0x205   : > { %v653_v50 = vadd.f32 %v652_v48, %v651_v47 }
 0x207   : > { %v654_v51 = vrot.slane %v653_v50, 2 }
 0x209   : > { %v655_v53 = vadd.f32 %v654_v51, %v653_v50 }
 0x20b   : > { %v656_v55 = vrot.slane %v655_v53, 1 }
 0x20d   : > { %v657_v57 = vadd.f32 %v656_v55, %v655_v53 }
 0x20f   : > { %v668_v58 = vadd.f32 %v667_v56, %v657_v57 }
 0x211   : > { %669 = vst [vmem:[%s243_s17] sm:$0x1] %v668_v58 }
 0x212   : > { %940 = shalt.err (!%p937_p3)
}
 0x213   : > { %s941_s10 = scalar_lea.hbm %s1201_s21, 16  ;;  %s945_s13 = scalar_lea.hbm %s1249_s6, 32 }
 0x214   : > { %p942_p4 = scmp.ne.s32.totalorder %s1201_s21, %s941_s10  ;;  %p946_p9 = scmp.lt.u32.totalorder %s1201_s21, %s1249_s6 }
 0x215   : > { %p947_p10 = scmp.lt.u32.totalorder %s945_s13, %s941_s10  ;;  %p949_p12 = scmp.lt.u32.totalorder %s941_s10, %s1201_s21 }
 0x216   : > { %p943_p7 = pnand %p942_p4, %p1069_p5 }
 0x217   : > { %p948_p11 = por %p947_p10, %p946_p9 }
 0x218   : > { %p944_p8 = pneg %p943_p7 }
 0x219   : > { %p950_p13 = por %p949_p12, %p948_p11 }
 0x21b   : > { %p951_p0 = pnand %p950_p13, %p944_p8 }
 0x21d   : > { %954 = shalt.err (!%p951_p0)
}
 0x21e   : > { %853 = dma.vmem_to_hbm [thread:$0]  (%p1069_p5), %s1203_s18, 16, %s1201_s21, %s671_s22  }
 0x21f PF: > { %p859_p1 = scmp.ge.s32.totalorder %s989_s26, 2  ;;  %s695_s16 = sand.u32 1, %s977_s23  }
 0x220   : > { %s696_s17 = scalar_lea.sflag [#allocation4], %s695_s16 }
 0x221   : > { %p856_p2 = pnand %p859_p1, %p1073_p6 }
 0x223   : > { %972 = dma.done.wait (!%p856_p2), %s696_s17, 16  }
 0x224   : > { %974 = vsyncadd (!%p856_p2), %s696_s17, 4294967280  ;;  %p18_p3 = scmp.ge.s32.totalorder %s1056_s28, 4   ;;  %s1252_s23 = smov %s981_s24 }
 0x225   : > { %s1253_s24 = smov %s985_s25  ;;  %s1254_s25 = smov %s1067_s7 }
 0x226   : > { %s1255_s26 = smov %s1056_s28  ;;  %20 = sbr.rel (!%p18_p3) target bundleno = 6 (0x6), region = 79 }
 0x22d   :  { %700 = vsyncpa [#allocation4], 1 }
 0x22e   :  { %702 = vsyncpa [#allocation4 + $0x1], 1 }

</bundles_post_ra>
